<compile_context>
chip_gen: v5e
topology: v5e:2x2
jax: 0.10.0
libtpu: 0.0.40
codegen_flags: <defaults>
</compile_context>

<pallas_src>
import functools

import jax
import jax.numpy as jnp
from jax.experimental import pallas as pl
from jax.experimental.pallas import tpu as pltpu


def _round_up(x, m):
    return (x + m - 1) // m * m


def _pick_tm(M):
    """Pick an M-tile that keeps padding waste small (fixes ~2x over-pad)."""
    Ma = _round_up(M, 8)
    if Ma <= 512:
        return Ma                      # single M tile, at most 7 padded rows
    for cand in (512, 256, 128, 64):
        Mp = _round_up(M, cand)
        if (Mp - M) <= max(cand // 8, M // 8):   # <= ~12.5% waste
            return cand
    return 64


# ---------------------------------------------------------------------------
# Pallas kernel: fused matmul + bias + ReLU.  Single K tile (K=1024), bf16
# operands on the MXU, f32 accumulate, lane-dense output block.
# ---------------------------------------------------------------------------
def _linear_relu_kernel(x_ref, w_ref, b_ref, o_ref):
    acc = jnp.dot(x_ref[...].astype(jnp.bfloat16), w_ref[...],
                  preferred_element_type=jnp.float32)
    acc = acc + b_ref[...]
    o_ref[...] = jnp.maximum(acc, 0.0).astype(o_ref.dtype)


def pallas_linear_relu(x, w_bf16, b):
    """ReLU(x @ w + b).  x:(M,K) f32, w:(K,N) bf16, b:(N,) f32."""
    M, K = x.shape
    K2, N = w_bf16.shape
    assert K == K2 and b.shape == (N,)
    assert N % 128 == 0, "N must be lane-aligned for this module (N=512)"

    tm = _pick_tm(M)
    Mp = _round_up(M, tm)
    # Cap tn at 256 so the N grid axis has extent >= 2 (v7x megacore), while
    # staying a multiple of 128 (unmasked, lane-dense stores).
    tn = 256 if N % 256 == 0 else 128
    tk = K  # single K tile -> no accumulator scratch, no K grid axis

    xp = x if M == Mp else jnp.pad(x, ((0, Mp - M), (0, 0)))
    b2 = b.reshape(1, N)

    grid = (Mp // tm, N // tn)

    cost = pl.CostEstimate(
        flops=2 * M * K * N,
        transcendentals=0,
        bytes_accessed=x.size * 4 + w_bf16.size * 2 + b.size * 4 + M * N * 4,
    )

    out = pl.pallas_call(
        _linear_relu_kernel,
        out_shape=jax.ShapeDtypeStruct((Mp, N), x.dtype),
        grid_spec=pltpu.PrefetchScalarGridSpec(
            num_scalar_prefetch=0,
            grid=grid,
            in_specs=[
                pl.BlockSpec((tm, tk), lambda i, j: (i, 0)),
                pl.BlockSpec((tk, tn), lambda i, j: (0, j)),
                pl.BlockSpec((1, tn), lambda i, j: (0, j)),
            ],
            out_specs=pl.BlockSpec((tm, tn), lambda i, j: (i, j)),
        ),
        compiler_params=pltpu.CompilerParams(
            dimension_semantics=("parallel", "parallel"),
            vmem_limit_bytes=32 * 1024 * 1024,
        ),
        cost_estimate=cost,
    )(xp, w_bf16, b2)

    return out if Mp == M else out[:M, :]


# ---------------------------------------------------------------------------
# mlps forward.
# ---------------------------------------------------------------------------
def mlps_forward(x, params):
    """x: (..., 1024) -> (..., 512).  ReLU(mlp1(x)); dropout = identity (eval)."""
    lead = x.shape[:-1]
    h = x.reshape(-1, x.shape[-1])
    y = pallas_linear_relu(h, params["mlp1_w"], params["mlp1_b"])
    return y.reshape(*lead, 512)


# ---------------------------------------------------------------------------
# Deterministic parameter init (PyTorch nn.Linear default: U(-1/sqrt(fan_in), +)).
# mlp1 weights stored bf16 (MXU-native; halves the dominant HBM weight read).
# ---------------------------------------------------------------------------
def _dense_init(key, fin, fout, w_dtype=jnp.float32):
    kw, kb = jax.random.split(key)
    lim = 1.0 / (fin ** 0.5)
    w = jax.random.uniform(kw, (fin, fout), jnp.float32, -lim, lim).astype(w_dtype)
    b = jax.random.uniform(kb, (fout,), jnp.float32, -lim, lim)
    return w, b


def init_params(key):
    keys = iter(jax.random.split(key, 8))
    p = {}

    def dense(name, fin, fout, w_dtype=jnp.float32):
        p[name + "_w"], p[name + "_b"] = _dense_init(next(keys), fin, fout, w_dtype)

    dense("mlp1", 1024, 512, w_dtype=jnp.bfloat16)
    # Defined by the module but unused in forward(); kept for fidelity.
    dense("mlp2", 1024, 256)
    dense("mlp3", 512, 256)
    dense("mlp4", 320, 256)
    dense("mlp5", 320, 320)
    return p


if __name__ == "__main__":
    key = jax.random.PRNGKey(0)
    pkey, xkey = jax.random.split(key)
    params = init_params(pkey)

    # Small batch; feature dim 1024 is fixed by nn.Linear(1024, 512).
    x = jax.random.normal(xkey, (8, 1024), jnp.float32)

    y = jax.jit(mlps_forward)(x, params)
    jax.block_until_ready(y)

    assert y.shape == (8, 512)

    # Sanity check against a plain-JAX reference (bf16 weights -> loose tol).
    ref = jnp.maximum(
        x @ params["mlp1_w"].astype(jnp.float32) + params["mlp1_b"], 0.0)
    assert jnp.allclose(y, ref, atol=1e-2, rtol=1e-2)

    print("KERNEL_OK")
</pallas_src>

<mosaic_0001>
module attributes {stable_mosaic.version = 11 : i64} {
  func.func @_linear_relu_kernel(%arg0: i32, %arg1: i32, %arg2: memref<8x1024xf32, #tpu.memory_space<vmem>>, %arg3: memref<1024x256xbf16, #tpu.memory_space<vmem>>, %arg4: memref<1x256xf32, #tpu.memory_space<vmem>>, %arg5: memref<8x256xf32, #tpu.memory_space<vmem>>) attributes {dimension_semantics = [#tpu.dimension_semantics<parallel>, #tpu.dimension_semantics<parallel>], iteration_bounds = array<i64: 1, 2>, scalar_prefetch = 0 : i64, scratch_operands = 0 : i64, tpu.core_type = #tpu.core_type<tc>, window_params = [{transform_indices = @transform_0, window_bounds = array<i64: 8, 1024>}, {transform_indices = @transform_1, window_bounds = array<i64: 1024, 256>}, {transform_indices = @transform_2, window_bounds = array<i64: 1, 256>}, {transform_indices = @transform_3, window_bounds = array<i64: 8, 256>}]} {
    %c0 = arith.constant 0 : index
    %c0_0 = arith.constant 0 : index
    %0 = vector.load %arg2[%c0, %c0_0] : memref<8x1024xf32, #tpu.memory_space<vmem>>, vector<8x1024xf32>
    %1 = arith.truncf %0 : vector<8x1024xf32> to vector<8x1024xbf16>
    %c0_1 = arith.constant 0 : index
    %c0_2 = arith.constant 0 : index
    %2 = vector.load %arg3[%c0_1, %c0_2] : memref<1024x256xbf16, #tpu.memory_space<vmem>>, vector<1024x256xbf16>
    %cst = arith.constant dense<0.000000e+00> : vector<8x256xf32>
    %3 = tpu.matmul %1, %2, %cst {dimension_numbers = #tpu.dot_dimension_numbers<[1], [0], [0], [1], [0, 0, 1, 1], [], []>} : vector<8x1024xbf16>, vector<1024x256xbf16>, vector<8x256xf32> -> vector<8x256xf32>
    %c0_3 = arith.constant 0 : index
    %c0_4 = arith.constant 0 : index
    %4 = vector.load %arg4[%c0_3, %c0_4] : memref<1x256xf32, #tpu.memory_space<vmem>>, vector<1x256xf32>
    %5 = vector.broadcast %4 : vector<1x256xf32> to vector<8x256xf32>
    %6 = arith.addf %3, %5 : vector<8x256xf32>
    %cst_5 = arith.constant 0.000000e+00 : f32
    %7 = vector.broadcast %cst_5 : f32 to vector<8x256xf32>
    %8 = arith.maximumf %6, %7 : vector<8x256xf32>
    %c0_6 = arith.constant 0 : index
    %c0_7 = arith.constant 0 : index
    %9 = vector.load %arg5[%c0_6, %c0_7] : memref<8x256xf32, #tpu.memory_space<vmem>>, vector<8x256xf32>
    tpu.vector_store %arg5[%c0_6, %c0_7], %8 {strides = array<i32>} : memref<8x256xf32, #tpu.memory_space<vmem>>, vector<8x256xf32>,
    return
  }
  func.func @transform_0(%arg0: i32, %arg1: i32) -> (i32, i32) {
    %c0_i32 = arith.constant 0 : i32
    %c0_i32_0 = arith.constant 0 : i32
    return %arg0, %c0_i32 : i32, i32
  }
  func.func @transform_1(%arg0: i32, %arg1: i32) -> (i32, i32) {
    %c0_i32 = arith.constant 0 : i32
    %c0_i32_0 = arith.constant 0 : i32
    return %c0_i32, %arg1 : i32, i32
  }
  func.func @transform_2(%arg0: i32, %arg1: i32) -> (i32, i32) {
    %c0_i32 = arith.constant 0 : i32
    %c0_i32_0 = arith.constant 0 : i32
    return %c0_i32, %arg1 : i32, i32
  }
  func.func @transform_3(%arg0: i32, %arg1: i32) -> (i32, i32) {
    %c0_i32 = arith.constant 0 : i32
    return %arg0, %arg1 : i32, i32
  }
}

</mosaic_0001>

<bundles_post_ra>
// kernel: mlps_forward.1
= control target key start
LH: loop header
LB: loop body
LE: loop exit
PB: predicated region body
PF: predicated region fallthrough
CT: control target
= control target key end

     0   :  { %8 = vsyncpa [#allocation3], 0  ;;  %s2817_s0 = inlined_call_operand.hbm [shape: f32[8,1024], index: 0, kind: input, shape index: {}]   ;;  %s2818_s1 = inlined_call_operand.hbm [shape: bf16[1024,512], index: 1, kind: input, shape index: {}]   ;;  %s2819_s2 = inlined_call_operand.hbm [shape: f32[1,512], index: 2, kind: input, shape index: {}]   ;;  %s2820_s3 = inlined_call_operand.hbm [shape: f32[8,512], index: 3, kind: output, shape index: {}]  }
   0x1   :  { %9 = vsyncpa [#allocation6], 0 }
   0x2   :  { %11 = vsyncpa [#allocation6 + $0x1], 0 }
   0x3   :  { %12 = vsyncpa [#allocation4], 0 }
   0x4   :  { %14 = vsyncpa [#allocation4 + $0x1], 0  ;;  %s2348_s12 = smov 0   ;;  %s2350_s13 = smov 0  }
   0x5   :  { %s2352_s14 = smov 0   ;;  %s2354_s15 = smov 0  }
   0x6   :  { %s2356_s16 = smov 0   ;;  %s2358_s17 = smov 0  }
   0x7 LB: > { %s29_s18 = sadd.s32 1, %s2318_s16  ;;  %s65_s19 = sadd.s32 1, %s2310_s14  ;;  %s2322_s17 = sphi %s2358_s17, %s20_s17   ;;  %s2318_s16 = sphi %s2356_s16, %s2831_s16   ;;  %s2314_s15 = sphi %s2354_s15, %s2830_s15   ;;  %s2310_s14 = sphi %s2352_s14, %s2829_s14   ;;  %s2306_s13 = sphi %s2350_s13, %s2828_s13   ;;  %s2302_s12 = sphi %s2348_s12, %s2827_s12  }
   0x8   : > { %p30_p0 = scmp.ge.s32.totalorder %s29_s18, 2  ;;  %p72_p1 = scmp.ne.s32.totalorder %s2310_s14, %s2306_s13 }
   0x9   : > { %p73_p2 = scmp.eq.s32.totalorder %s2322_s17, 0  ;;  %p1407_p3 = scmp.ge.s32.totalorder %s2322_s17, 2 }
   0xa   : > { %s2833_s18 = smov (%p30_p0, %s29_s18), 0  ;;  %p2091_p5 = scmp.lt.s32.totalorder %s2322_s17, 2 }
   0xb   : > { %p2389_p4 = por %p73_p2, %p72_p1  ;;  %s62_s21 = ssub.s32 %s2318_s16, %s2833_s18 }
   0xc   : > { %s171_s22 = sand.u32 1, %s2322_s17   ;;  %p63_p6 = scmp.eq.s32.totalorder %s62_s21, 0 }
   0xd   : > { %s173_s23 = sand.u32 1, %s2310_s14   ;;  %s1935_s24 = sshll.u32 %s2318_s16, 3 }
   0xe   : > { %s2400_s25 = scalar_select %p63_p6, %s2310_s14, %s65_s19  }
   0xf   : > { %s1408_s26 = sshll.u32 %s173_s23, 10  ;;  %s180_s29 = scalar_lea.hbm %s2818_s1, %s1935_s24 }
  0x10   : > { %s181_s30 = sshll.u32 %s180_s29, 4  ;;  %s175_s4 = scalar_lea.vmem [#allocation5], %s1408_s26  ;;  %s182_s30 = int_to_ptr.hbm [resolvable:$true] %s181_s30 }
  0x11   : > { %s183_s5 = sshll.u32 %s175_s4, 4  ;;  %p2411_p7 = pnand %p2091_p5, %p2389_p4  ;;  %s184_s5 = int_to_ptr.vmem [resolvable:$true] %s183_s5 }
  0x12   : > { %s2415_s7 = scalar_lea.sflag [#allocation6], %s171_s22  ;;  %s2324_s8 = smov 256  }
  0x13   : > { %s2325_s9 = smov 128   ;;  %s2326_s10 = smov 8  }
  0x14   : > { %2082 = dma.hbm_to_vmem [thread:$0]  (!%p2411_p7), %s182_s30, 16384, %s184_s5, %s2415_s7, %s2324_s8, %s2325_s9, %s2326_s10  }
  0x15   : > { %s2421_s11 = sadd.s32 4294967295, %s2322_s17   ;;  %s1404_s19 = sadd.s32 4294967294, %s2322_s17  }
  0x16   : > { %p78_p8 = scmp.ne.s32.totalorder %s2306_s13, %s2302_s12  ;;  %p79_p9 = scmp.eq.s32.totalorder %s2421_s11, 0 }
  0x17   : > { %p130_p10 = scmp.eq.s32.totalorder %s2421_s11, 1  ;;  %p136_p11 = scmp.eq.s32.totalorder %s1404_s19, 1 }
  0x18   : > { %p2430_p12 = por %p79_p9, %p78_p8  ;;  %p1405_p13 = scmp.ge.s32.totalorder %s2322_s17, 1 }
  0x19   : > { %p2438_p0 = por %p130_p10, %p72_p1  ;;  %p2442_p2 = por %p136_p11, %p78_p8 }
  0x1a   : > { %p143_p4 = scmp.lt.s32.totalorder %s2322_s17, 3  ;;  %s158_s27 = sshll.u32 %s2817_s0, 4  ;;  %s159_s27 = int_to_ptr.hbm [resolvable:$true] %s158_s27 }
  0x1b   : > { %s2327_s29 = smov [#allocation2]   ;;  %s1411_s4 = sshll.u32 %s173_s23, 1 }
  0x1c   : > { %p2450_p5 = pnand %p1405_p13, %p143_p4  ;;  %s160_s30 = sshll.u32 %s2327_s29, 4  ;;  %s161_s30 = int_to_ptr.vmem [resolvable:$true] %s160_s30 }
  0x1d   : > { %s1412_s5 = sshll.u32 %s2318_s16, 1  ;;  %s197_s24 = scalar_lea.vmem [#allocation7], %s1411_s4 }
  0x1e   : > { %p2075_p1 = pneg %p2450_p5  ;;  %s201_s10 = scalar_lea.hbm %s2819_s2, %s1412_s5 }
  0x1f   : > { %s203_s19 = sshll.u32 %s201_s10, 4  ;;  %s205_s26 = sshll.u32 %s197_s24, 4  ;;  %s204_s19 = int_to_ptr.hbm [resolvable:$true] %s203_s19  ;;  %s206_s26 = int_to_ptr.vmem [resolvable:$true] %s205_s26 }
  0x20   : > { %p2076_p6 = pnand %p2075_p1, %p79_p9  ;;  %214 = sbr.rel (%p2450_p5) target bundleno = 316 (0x13c), region = 32 }
  0x21   : > { %2085 = dma.hbm_to_vmem [thread:$0]  (!%p2411_p7), %s204_s19, 32, %s206_s26, %s2415_s7  }
  0x22   : > { %2078 = dma.hbm_to_vmem [thread:$0]  (!%p2076_p6), %s159_s27, 1024, %s161_s30, [#allocation3]  }
  0x25   : > { %2289 = dma.done.wait (%p79_p9), [#allocation3], 1024  }
  0x26   : > { %2291 = vsyncadd (%p79_p9), [#allocation3], 4294966272  ;;  %s221_s23 = sand.u32 1, %s2421_s11   ;;  %s2475_s29 = sand.u32 1, %s2306_s13  }
  0x27   : > { %s1415_s27 = sshll.u32 %s2475_s29, 10  ;;  %s222_s30 = scalar_lea.sflag [#allocation6], %s221_s23 }
  0x28   : > { %s2478_s6 = scalar_lea.vmem [#allocation5], %s1415_s27 }
  0x29   : > { %2293 = dma.done.wait (%p2430_p12), %s222_s30, 16416  }
  0x2a   : > { %2295 = vsyncadd (%p2430_p12), %s222_s30, 4294950880  ;;  %v1476_v0 = vld [vmem:[%s2478_s6 + $0x70] sm:$0xf]  ;;  %v1951_v1 = vld [vmem:[%s2478_s6 + $0x74] sm:$0xf0]  ;;  %s1416_s7 = sshll.u32 %s2475_s29, 1 }
  0x2b   : > { %v1540_v2 = vld [vmem:[%s2478_s6 + $0xf0] sm:$0xf]  ;;  %v1477_v3 = vor.u32 %v1951_v1, %v1476_v0  ;;  %v1967_v4 = vld [vmem:[%s2478_s6 + $0xf4] sm:$0xf0]  ;;  %v1468_v11 = vld [vmem:[%s2478_s6 + $0x60] sm:$0xf] }
  0x2c   : > { %v1604_v5 = vld [vmem:[%s2478_s6 + $0x170] sm:$0xf]  ;;  %v1983_v6 = vld [vmem:[%s2478_s6 + $0x174] sm:$0xf0]  ;;  %v1541_v7 = vor.u32 %v1967_v4, %v1540_v2  ;;  %v1949_v13 = vld [vmem:[%s2478_s6 + $0x64] sm:$0xf0] }
  0x2d   : > { %v1605_v8 = vor.u32 %v1983_v6, %v1604_v5  ;;  %v1668_v9 = vld [vmem:[%s2478_s6 + $0x1f0] sm:$0xf]  ;;  %v1999_v10 = vld [vmem:[%s2478_s6 + $0x1f4] sm:$0xf0]  ;;  %1057 = vmatpush.bf16.msra.mxu0 %v1477_v3  ;;  %v1532_v14 = vld [vmem:[%s2478_s6 + $0xe0] sm:$0xf]  ;;  %v1469_v16 = vor.u32 %v1949_v13, %v1468_v11 }
  0x2e   : > { %v1669_v12 = vor.u32 %v1999_v10, %v1668_v9  ;;  %v1965_v15 = vld [vmem:[%s2478_s6 + $0xe4] sm:$0xf0]  ;;  %1070 = vmatpush.bf16.msra.mxu1 %v1541_v7  ;;  %v1596_v18 = vld [vmem:[%s2478_s6 + $0x160] sm:$0xf]  ;;  %v1460_v23 = vld [vmem:[%s2478_s6 + $0x50] sm:$0xf] }
  0x2f   : > { %1083 = vmatpush.bf16.msra.mxu2 %v1605_v8  ;;  %v1533_v17 = vor.u32 %v1965_v15, %v1532_v14  ;;  %v1981_v19 = vld [vmem:[%s2478_s6 + $0x164] sm:$0xf0]  ;;  %v1660_v20 = vld [vmem:[%s2478_s6 + $0x1e0] sm:$0xf]  ;;  %v1947_v24 = vld [vmem:[%s2478_s6 + $0x54] sm:$0xf0] }
  0x30   : > { %1096 = vmatpush.bf16.msra.mxu3 %v1669_v12  ;;  %v1597_v21 = vor.u32 %v1981_v19, %v1596_v18  ;;  %v1997_v22 = vld [vmem:[%s2478_s6 + $0x1e4] sm:$0xf0]  ;;  %v1524_v26 = vld [vmem:[%s2478_s6 + $0xd0] sm:$0xf]  ;;  %v1963_v27 = vld [vmem:[%s2478_s6 + $0xd4] sm:$0xf0]  ;;  %v1461_v29 = vor.u32 %v1947_v24, %v1460_v23 }
  0x31   : > { %v1661_v25 = vor.u32 %v1997_v22, %v1660_v20  ;;  %v1588_v28 = vld [vmem:[%s2478_s6 + $0x150] sm:$0xf]  ;;  %1058 = vmatpush.bf16.msra.mxu0 %v1469_v16  ;;  %v1979_v30 = vld [vmem:[%s2478_s6 + $0x154] sm:$0xf0]  ;;  %v1525_v33 = vor.u32 %v1963_v27, %v1524_v26  ;;  %v1452_v35 = vld [vmem:[%s2478_s6 + $0x40] sm:$0xf] }
  0x32   : > { %v1652_v31 = vld [vmem:[%s2478_s6 + $0x1d0] sm:$0xf]  ;;  %v1995_v32 = vld [vmem:[%s2478_s6 + $0x1d4] sm:$0xf0]  ;;  %1071 = vmatpush.bf16.msra.mxu1 %v1533_v17  ;;  %v1589_v34 = vor.u32 %v1979_v30, %v1588_v28  ;;  %v1945_v36 = vld [vmem:[%s2478_s6 + $0x44] sm:$0xf0] }
  0x33   : > { %1084 = vmatpush.bf16.msra.mxu2 %v1597_v21  ;;  %v1516_v37 = vld [vmem:[%s2478_s6 + $0xc0] sm:$0xf]  ;;  %v1653_v38 = vor.u32 %v1995_v32, %v1652_v31  ;;  %v1961_v39 = vld [vmem:[%s2478_s6 + $0xc4] sm:$0xf0]  ;;  %v1453_v44 = vor.u32 %v1945_v36, %v1452_v35  ;;  %v1444_v47 = vld [vmem:[%s2478_s6 + $0x30] sm:$0xf] }
  0x34   : > { %1097 = vmatpush.bf16.msra.mxu3 %v1661_v25  ;;  %v1580_v40 = vld [vmem:[%s2478_s6 + $0x140] sm:$0xf]  ;;  %v1977_v41 = vld [vmem:[%s2478_s6 + $0x144] sm:$0xf0]  ;;  %v1517_v45 = vor.u32 %v1961_v39, %v1516_v37  ;;  %v1943_v48 = vld [vmem:[%s2478_s6 + $0x34] sm:$0xf0] }
  0x35   : > { %v1644_v42 = vld [vmem:[%s2478_s6 + $0x1c0] sm:$0xf]  ;;  %v1993_v43 = vld [vmem:[%s2478_s6 + $0x1c4] sm:$0xf0]  ;;  %1059 = vmatpush.bf16.msra.mxu0 %v1461_v29  ;;  %v1581_v46 = vor.u32 %v1977_v41, %v1580_v40  ;;  %v1508_v49 = vld [vmem:[%s2478_s6 + $0xb0] sm:$0xf]  ;;  %v1445_v56 = vor.u32 %v1943_v48, %v1444_v47 }
  0x36   : > { %1072 = vmatpush.bf16.msra.mxu1 %v1525_v33  ;;  %v1645_v50 = vor.u32 %v1993_v43, %v1644_v42  ;;  %v1959_v51 = vld [vmem:[%s2478_s6 + $0xb4] sm:$0xf0]  ;;  %v1572_v52 = vld [vmem:[%s2478_s6 + $0x130] sm:$0xf]  ;;  %v1436_v59 = vld [vmem:[%s2478_s6 + $0x20] sm:$0xf] }
  0x37   : > { %1085 = vmatpush.bf16.msra.mxu2 %v1589_v34  ;;  %v1975_v53 = vld [vmem:[%s2478_s6 + $0x134] sm:$0xf0]  ;;  %v1636_v54 = vld [vmem:[%s2478_s6 + $0x1b0] sm:$0xf]  ;;  %v1509_v57 = vor.u32 %v1959_v51, %v1508_v49  ;;  %v1941_v60 = vld [vmem:[%s2478_s6 + $0x24] sm:$0xf0] }
  0x38   : > { %1098 = vmatpush.bf16.msra.mxu3 %v1653_v38  ;;  %v1991_v55 = vld [vmem:[%s2478_s6 + $0x1b4] sm:$0xf0]  ;;  %v1573_v58 = vor.u32 %v1975_v53, %v1572_v52  ;;  %v1500_v61 = vld [vmem:[%s2478_s6 + $0xa0] sm:$0xf]  ;;  %v1957_v63 = vld [vmem:[%s2478_s6 + $0xa4] sm:$0xf0]  ;;  %v1437_v4 = vor.u32 %v1941_v60, %v1436_v59 }
  0x39   : > { %1060 = vmatpush.bf16.msra.mxu0 %v1453_v44  ;;  %v1637_v62 = vor.u32 %v1991_v55, %v1636_v54  ;;  %v1564_v0 = vld [vmem:[%s2478_s6 + $0x120] sm:$0xf]  ;;  %v1973_v1 = vld [vmem:[%s2478_s6 + $0x124] sm:$0xf0]  ;;  %v1501_v5 = vor.u32 %v1957_v63, %v1500_v61  ;;  %v1428_v7 = vld [vmem:[%s2478_s6 + $0x10] sm:$0xf] }
  0x3a   : > { %1073 = vmatpush.bf16.msra.mxu1 %v1517_v45  ;;  %v1628_v2 = vld [vmem:[%s2478_s6 + $0x1a0] sm:$0xf]  ;;  %v1989_v3 = vld [vmem:[%s2478_s6 + $0x1a4] sm:$0xf0]  ;;  %v1565_v6 = vor.u32 %v1973_v1, %v1564_v0  ;;  %v1939_v8 = vld [vmem:[%s2478_s6 + $0x14] sm:$0xf0] }
  0x3b   : > { %1086 = vmatpush.bf16.msra.mxu2 %v1581_v46  ;;  %v1492_v9 = vld [vmem:[%s2478_s6 + $0x90] sm:$0xf]  ;;  %v1629_v10 = vor.u32 %v1989_v3, %v1628_v2  ;;  %v1955_v11 = vld [vmem:[%s2478_s6 + $0x94] sm:$0xf0]  ;;  %v1429_v16 = vor.u32 %v1939_v8, %v1428_v7  ;;  %v1420_v17 = vld [vmem:[%s2478_s6] sm:$0xf] }
  0x3c   : > { %1099 = vmatpush.bf16.msra.mxu3 %v1645_v50  ;;  %v1556_v12 = vld [vmem:[%s2478_s6 + $0x110] sm:$0xf]  ;;  %v1971_v13 = vld [vmem:[%s2478_s6 + $0x114] sm:$0xf0]  ;;  %v1937_v18 = vld [vmem:[%s2478_s6 + $0x4] sm:$0xf0]  ;;  %v1493_v19 = vor.u32 %v1955_v11, %v1492_v9 }
  0x3d   : > { %1061 = vmatpush.bf16.msra.mxu0 %v1445_v56  ;;  %v1620_v14 = vld [vmem:[%s2478_s6 + $0x190] sm:$0xf]  ;;  %v1987_v15 = vld [vmem:[%s2478_s6 + $0x194] sm:$0xf0]  ;;  %v1557_v20 = vor.u32 %v1971_v13, %v1556_v12  ;;  %v1484_v21 = vld [vmem:[%s2478_s6 + $0x80] sm:$0xf]  ;;  %v1421_v31 = vor.u32 %v1937_v18, %v1420_v17 }
  0x3e   : > { %1074 = vmatpush.bf16.msra.mxu1 %v1509_v57  ;;  %v1953_v22 = vld [vmem:[%s2478_s6 + $0x84] sm:$0xf0]  ;;  %v1548_v23 = vld [vmem:[%s2478_s6 + $0x100] sm:$0xf]  ;;  %v1621_v24 = vor.u32 %v1987_v15, %v1620_v14  ;;  %v1732_v28 = vld [vmem:[%s2478_s6 + $0x270] sm:$0xf] }
  0x3f   : > { %1087 = vmatpush.bf16.msra.mxu2 %v1573_v58  ;;  %v1969_v25 = vld [vmem:[%s2478_s6 + $0x104] sm:$0xf0]  ;;  %v1612_v26 = vld [vmem:[%s2478_s6 + $0x180] sm:$0xf]  ;;  %v2015_v29 = vld [vmem:[%s2478_s6 + $0x274] sm:$0xf0]  ;;  %v1485_v35 = vor.u32 %v1953_v22, %v1484_v21 }
  0x40   : > { %1100 = vmatpush.bf16.msra.mxu3 %v1637_v62  ;;  %v1985_v27 = vld [vmem:[%s2478_s6 + $0x184] sm:$0xf0]  ;;  %v1796_v30 = vld [vmem:[%s2478_s6 + $0x2f0] sm:$0xf]  ;;  %v2031_v32 = vld [vmem:[%s2478_s6 + $0x2f4] sm:$0xf0]  ;;  %v1549_v36 = vor.u32 %v1969_v25, %v1548_v23  ;;  %v1733_v40 = vor.u32 %v2015_v29, %v1732_v28 }
  0x41   : > { %1062 = vmatpush.bf16.msra.mxu0 %v1437_v4  ;;  %v1860_v33 = vld [vmem:[%s2478_s6 + $0x370] sm:$0xf]  ;;  %v2047_v34 = vld [vmem:[%s2478_s6 + $0x374] sm:$0xf0]  ;;  %v1613_v39 = vor.u32 %v1985_v27, %v1612_v26  ;;  %v1797_v41 = vor.u32 %v2031_v32, %v1796_v30  ;;  %v1724_v43 = vld [vmem:[%s2478_s6 + $0x260] sm:$0xf] }
  0x42   : > { %1075 = vmatpush.bf16.msra.mxu1 %v1501_v5  ;;  %v1924_v37 = vld [vmem:[%s2478_s6 + $0x3f0] sm:$0xf]  ;;  %v2063_v38 = vld [vmem:[%s2478_s6 + $0x3f4] sm:$0xf0]  ;;  %v1861_v42 = vor.u32 %v2047_v34, %v1860_v33  ;;  %v2013_v44 = vld [vmem:[%s2478_s6 + $0x264] sm:$0xf0] }
  0x43   : > { %1088 = vmatpush.bf16.msra.mxu2 %v1565_v6  ;;  %v1788_v45 = vld [vmem:[%s2478_s6 + $0x2e0] sm:$0xf]  ;;  %v1925_v46 = vor.u32 %v2063_v38, %v1924_v37  ;;  %v2029_v47 = vld [vmem:[%s2478_s6 + $0x2e4] sm:$0xf0]  ;;  %v1725_v52 = vor.u32 %v2013_v44, %v1724_v43  ;;  %v1716_v53 = vld [vmem:[%s2478_s6 + $0x250] sm:$0xf] }
  0x44   : > { %1101 = vmatpush.bf16.msra.mxu3 %v1629_v10  ;;  %v1852_v48 = vld [vmem:[%s2478_s6 + $0x360] sm:$0xf]  ;;  %v2045_v49 = vld [vmem:[%s2478_s6 + $0x364] sm:$0xf0]  ;;  %v1789_v54 = vor.u32 %v2029_v47, %v1788_v45  ;;  %v2011_v56 = vld [vmem:[%s2478_s6 + $0x254] sm:$0xf0] }
  0x45   : > { %1063 = vmatpush.bf16.msra.mxu0 %v1429_v16  ;;  %v1916_v50 = vld [vmem:[%s2478_s6 + $0x3e0] sm:$0xf]  ;;  %v2061_v51 = vld [vmem:[%s2478_s6 + $0x3e4] sm:$0xf0]  ;;  %v1853_v55 = vor.u32 %v2045_v49, %v1852_v48  ;;  %v1780_v57 = vld [vmem:[%s2478_s6 + $0x2d0] sm:$0xf]  ;;  %v1717_v2 = vor.u32 %v2011_v56, %v1716_v53 }
  0x46   : > { %1076 = vmatpush.bf16.msra.mxu1 %v1493_v19  ;;  %v269_v58 = vld [vmem:[#allocation2 + $0x10] sm:$0xff]  ;;  %v1917_v59 = vor.u32 %v2061_v51, %v1916_v50  ;;  %v2027_v60 = vld [vmem:[%s2478_s6 + $0x2d4] sm:$0xf0]  ;;  %v1708_v3 = vld [vmem:[%s2478_s6 + $0x240] sm:$0xf]  ;;  %s235_s11 = scalar_lea.vmem [#allocation7], %s1416_s7 }
  0x47   : > { %1089 = vmatpush.bf16.msra.mxu2 %v1557_v20  ;;  %v1844_v61 = vld [vmem:[%s2478_s6 + $0x350] sm:$0xf]  ;;  %v2043_v62 = vld [vmem:[%s2478_s6 + $0x354] sm:$0xf0]  ;;  %v2570_v63 = vpack.c.bf16 %v269_v58, %v269_v58  ;;  %v2009_v4 = vld [vmem:[%s2478_s6 + $0x244] sm:$0xf0]  ;;  %v1781_v6 = vor.u32 %v2027_v60, %v1780_v57 }
  0x48   : > { %1102 = vmatpush.bf16.msra.mxu3 %v1621_v24  ;;  %v1908_v0 = vld [vmem:[%s2478_s6 + $0x3d0] sm:$0xf]  ;;  %v2059_v1 = vld [vmem:[%s2478_s6 + $0x3d4] sm:$0xf0]  ;;  %v267_v5 = vld [vmem:[#allocation2] sm:$0xff]  ;;  %v1845_v7 = vor.u32 %v2043_v62, %v1844_v61  ;;  %v1709_v20 = vor.u32 %v2009_v4, %v1708_v3  ;;  %s1417_s20 = sshll.u32 %s2475_s29, 4 }
  0x49   : > { %1064 = vmatpush.bf16.msra.mxu0 %v1421_v31  ;;  %v1772_v8 = vld [vmem:[%s2478_s6 + $0x2c0] sm:$0xf]  ;;  %v2578_v9 = vpack.c.bf16 %v267_v5, %v267_v5  ;;  %v270_v10 = vld [vmem:[#allocation2 + $0x18] sm:$0xff]  ;;  %v268_v11 = vld [vmem:[#allocation2 + $0x8] sm:$0xff]  ;;  %v1909_v12 = vor.u32 %v2059_v1, %v1908_v0  ;;  %s2774_s28 = scalar_lea.vmem [#allocation8], %s1417_s20  ;;  %s2064_s4 = sshll.u32 %s2314_s15, 4 }
  0x4a   : > { %1077 = vmatpush.bf16.msra.mxu1 %v1485_v35  ;;  %v2025_v13 = vld [vmem:[%s2478_s6 + $0x2c4] sm:$0xf0]  ;;  %v1836_v14 = vld [vmem:[%s2478_s6 + $0x340] sm:$0xf]  ;;  %v2583_v16 = vpack.c.bf16 %v270_v10, %v270_v10  ;;  %v2585_v17 = vpack.c.bf16 %v268_v11, %v268_v11  ;;  %v1700_v23 = vld [vmem:[%s2478_s6 + $0x230] sm:$0xf]  ;;  %s1283_s9 = scalar_lea.hbm %s2820_s3, %s2064_s4 }
  0x4b   : > { %1090 = vmatpush.bf16.msra.mxu2 %v1549_v36  ;;  %v2041_v15 = vld [vmem:[%s2478_s6 + $0x344] sm:$0xf0]  ;;  %v1900_v18 = vld [vmem:[%s2478_s6 + $0x3c0] sm:$0xf]  ;;  %v1773_v21 = vor.u32 %v2025_v13, %v1772_v8  ;;  %v2007_v24 = vld [vmem:[%s2478_s6 + $0x234] sm:$0xf0] }
  0x4c   : > { %1103 = vmatpush.bf16.msra.mxu3 %v1613_v39  ;;  %v2057_v19 = vld [vmem:[%s2478_s6 + $0x3c4] sm:$0xf0]  ;;  %1065 = vmatmul.bf16.vlgmr.msra.gmra.mxu0 %v2578_v9  ;;  %v1837_v22 = vor.u32 %v2041_v15, %v1836_v14  ;;  %v1764_v25 = vld [vmem:[%s2478_s6 + $0x2b0] sm:$0xf]  ;;  %v2023_v27 = vld [vmem:[%s2478_s6 + $0x2b4] sm:$0xf0]  ;;  %v1701_v32 = vor.u32 %v2007_v24, %v1700_v23 }
  0x4d   : > { %1109 = vmatpush.bf16.msrb.mxu0 %v1733_v40  ;;  %v1901_v26 = vor.u32 %v2057_v19, %v1900_v18  ;;  %v1828_v28 = vld [vmem:[%s2478_s6 + $0x330] sm:$0xf]  ;;  %v2039_v29 = vld [vmem:[%s2478_s6 + $0x334] sm:$0xf0]  ;;  %1078 = vmatmul.bf16.vlgmr.msra.gmra.mxu1 %v2585_v17  ;;  %v1765_v33 = vor.u32 %v2023_v27, %v1764_v25  ;;  %v1692_v35 = vld [vmem:[%s2478_s6 + $0x220] sm:$0xf] }
  0x4e   : > { %1122 = vmatpush.bf16.msrb.mxu1 %v1797_v41  ;;  %1091 = vmatmul.bf16.vlgmr.msra.gmra.mxu2 %v2570_v63  ;;  %v1892_v30 = vld [vmem:[%s2478_s6 + $0x3b0] sm:$0xf]  ;;  %v2055_v31 = vld [vmem:[%s2478_s6 + $0x3b4] sm:$0xf0]  ;;  %v1829_v34 = vor.u32 %v2039_v29, %v1828_v28  ;;  %v2005_v36 = vld [vmem:[%s2478_s6 + $0x224] sm:$0xf0] }
  0x4f   : > { %1135 = vmatpush.bf16.msrb.mxu2 %v1861_v42  ;;  %1104 = vmatmul.bf16.vlgmr.msra.gmra.mxu3 %v2583_v16  ;;  %v1756_v37 = vld [vmem:[%s2478_s6 + $0x2a0] sm:$0xf]  ;;  %v1893_v38 = vor.u32 %v2055_v31, %v1892_v30  ;;  %v2021_v39 = vld [vmem:[%s2478_s6 + $0x2a4] sm:$0xf0]  ;;  %v1693_v44 = vor.u32 %v2005_v36, %v1692_v35  ;;  %v1684_v47 = vld [vmem:[%s2478_s6 + $0x210] sm:$0xf] }
  0x50   : > { %1148 = vmatpush.bf16.msrb.mxu3 %v1925_v46  ;;  %v1820_v40 = vld [vmem:[%s2478_s6 + $0x320] sm:$0xf]  ;;  %v2037_v41 = vld [vmem:[%s2478_s6 + $0x324] sm:$0xf0]  ;;  %v1757_v45 = vor.u32 %v2021_v39, %v1756_v37  ;;  %v2003_v48 = vld [vmem:[%s2478_s6 + $0x214] sm:$0xf0] }
  0x51   : > { %1110 = vmatpush.bf16.msrb.mxu0 %v1725_v52  ;;  %v1884_v42 = vld [vmem:[%s2478_s6 + $0x3a0] sm:$0xf]  ;;  %v2053_v43 = vld [vmem:[%s2478_s6 + $0x3a4] sm:$0xf0]  ;;  %v1821_v46 = vor.u32 %v2037_v41, %v1820_v40  ;;  %v1748_v49 = vld [vmem:[%s2478_s6 + $0x290] sm:$0xf]  ;;  %v1685_v56 = vor.u32 %v2003_v48, %v1684_v47 }
  0x52   : > { %1123 = vmatpush.bf16.msrb.mxu1 %v1789_v54  ;;  %v1885_v50 = vor.u32 %v2053_v43, %v1884_v42  ;;  %v2019_v51 = vld [vmem:[%s2478_s6 + $0x294] sm:$0xf0]  ;;  %v1812_v52 = vld [vmem:[%s2478_s6 + $0x310] sm:$0xf]  ;;  %v1676_v57 = vld [vmem:[%s2478_s6 + $0x200] sm:$0xf] }
  0x53   : > { %1136 = vmatpush.bf16.msrb.mxu2 %v1853_v55  ;;  %v2035_v53 = vld [vmem:[%s2478_s6 + $0x314] sm:$0xf0]  ;;  %v1876_v54 = vld [vmem:[%s2478_s6 + $0x390] sm:$0xf]  ;;  %v2001_v58 = vld [vmem:[%s2478_s6 + $0x204] sm:$0xf0] }
  0x54   : > { %1149 = vmatpush.bf16.msrb.mxu3 %v1917_v59  ;;  %v2051_v55 = vld [vmem:[%s2478_s6 + $0x394] sm:$0xf0]  ;;  %v1749_v59 = vor.u32 %v2019_v51, %v1748_v49  ;;  %v1813_v60 = vor.u32 %v2035_v53, %v1812_v52  ;;  %v1740_v61 = vld [vmem:[%s2478_s6 + $0x280] sm:$0xf]  ;;  %v2017_v62 = vld [vmem:[%s2478_s6 + $0x284] sm:$0xf0]  ;;  %v1677_v8 = vor.u32 %v2001_v58, %v1676_v57 }
  0x55   : > { %1111 = vmatpush.bf16.msrb.mxu0 %v1717_v2  ;;  %v1804_v0 = vld [vmem:[%s2478_s6 + $0x300] sm:$0xf]  ;;  %v1877_v1 = vor.u32 %v2051_v55, %v1876_v54  ;;  %v2033_v2 = vld [vmem:[%s2478_s6 + $0x304] sm:$0xf0]  ;;  %v1950_v5 = vld [vmem:[%s2478_s6 + $0x74] sm:$0xf]  ;;  %v1741_v13 = vor.u32 %v2017_v62, %v1740_v61 }
  0x56   : > { %1124 = vmatpush.bf16.msrb.mxu1 %v1781_v6  ;;  %v1868_v3 = vld [vmem:[%s2478_s6 + $0x380] sm:$0xf]  ;;  %v2049_v4 = vld [vmem:[%s2478_s6 + $0x384] sm:$0xf0]  ;;  %v1478_v6 = vld [vmem:[%s2478_s6 + $0x78] sm:$0xf0]  ;;  %v1805_v14 = vor.u32 %v2033_v2, %v1804_v0 }
  0x57   : > { %1137 = vmatpush.bf16.msrb.mxu2 %v1845_v7  ;;  %v1966_v7 = vld [vmem:[%s2478_s6 + $0xf4] sm:$0xf]  ;;  %v1542_v10 = vld [vmem:[%s2478_s6 + $0xf8] sm:$0xf0]  ;;  %v271_v23 = vld [vmem:[#allocation2 + $0x20] sm:$0xff]  ;;  %s1285_s10 = sshll.u32 %s2774_s28, 4  ;;  %s1286_s10 = int_to_ptr.vmem [resolvable:$true] %s1285_s10 }
  0x58   : > { %1150 = vmatpush.bf16.msrb.mxu3 %v1909_v12  ;;  %v1982_v11 = vld [vmem:[%s2478_s6 + $0x174] sm:$0xf]  ;;  %v1606_v12 = vld [vmem:[%s2478_s6 + $0x178] sm:$0xf0]  ;;  %v1545_v25 = vor.u32 %v1966_v7, %v1542_v10  ;;  %v1470_v27 = vld [vmem:[%s2478_s6 + $0x68] sm:$0xf0]  ;;  %v2642_v37 = vpack.c.bf16 %v271_v23, %v271_v23 }
  0x59   : > { %1112 = vmatpush.bf16.msrb.mxu0 %v1709_v20  ;;  %v1998_v15 = vld [vmem:[%s2478_s6 + $0x1f4] sm:$0xf]  ;;  %v1670_v18 = vld [vmem:[%s2478_s6 + $0x1f8] sm:$0xf0]  ;;  %v1869_v20 = vor.u32 %v2049_v4, %v1868_v3  ;;  %v1964_v28 = vld [vmem:[%s2478_s6 + $0xe4] sm:$0xf] }
  0x5a   : > { %1125 = vmatpush.bf16.msrb.mxu1 %v1773_v21  ;;  %v273_v19 = vld [vmem:[#allocation2 + $0x30] sm:$0xff]  ;;  %v1481_v21 = vor.u32 %v1950_v5, %v1478_v6  ;;  %v274_v24 = vld [vmem:[#allocation2 + $0x38] sm:$0xff]  ;;  %v272_v29 = vld [vmem:[#allocation2 + $0x28] sm:$0xff]  ;;  %v1673_v30 = vor.u32 %v1998_v15, %v1670_v18  ;;  %s1287_s19 = sshll.u32 %s1283_s9, 4  ;;  %s1270_s15 = scalar_lea.sflag [#allocation4], %s2475_s29  ;;  %s1288_s19 = int_to_ptr.hbm [resolvable:$true] %s1287_s19 }
  0x5b   : > { %1138 = vmatpush.bf16.msrb.mxu2 %v1837_v22  ;;  %v1948_v22 = vld [vmem:[%s2478_s6 + $0x64] sm:$0xf]  ;;  %v1534_v31 = vld [vmem:[%s2478_s6 + $0xe8] sm:$0xf0]  ;;  %v2646_v40 = vpack.c.bf16 %v272_v29, %v272_v29  ;;  %v1946_v43 = vld [vmem:[%s2478_s6 + $0x54] sm:$0xf] }
  0x5c   : > { %1151 = vmatpush.bf16.msrb.mxu3 %v1901_v26  ;;  %v1609_v26 = vor.u32 %v1982_v11, %v1606_v12  ;;  %v1996_v35 = vld [vmem:[%s2478_s6 + $0x1e4] sm:$0xf]  ;;  %v1662_v36 = vld [vmem:[%s2478_s6 + $0x1e8] sm:$0xf0]  ;;  %v1473_v39 = vor.u32 %v1948_v22, %v1470_v27  ;;  %v1537_v41 = vor.u32 %v1964_v28, %v1534_v31  ;;  %v1526_v47 = vld [vmem:[%s2478_s6 + $0xd8] sm:$0xf0] }
  0x5d   : > { %1113 = vmatpush.bf16.msrb.mxu0 %v1701_v32  ;;  %v1980_v32 = vld [vmem:[%s2478_s6 + $0x164] sm:$0xf]  ;;  %v1978_v48 = vld [vmem:[%s2478_s6 + $0x154] sm:$0xf]  ;;  %v1590_v49 = vld [vmem:[%s2478_s6 + $0x158] sm:$0xf0] }
  0x5e   : > { %1126 = vmatpush.bf16.msrb.mxu1 %v1765_v33  ;;  %v1598_v33 = vld [vmem:[%s2478_s6 + $0x168] sm:$0xf0]  ;;  %v1654_v51 = vld [vmem:[%s2478_s6 + $0x1d8] sm:$0xf0]  ;;  %v1593_v54 = vor.u32 %v1978_v48, %v1590_v49  ;;  %v1944_v55 = vld [vmem:[%s2478_s6 + $0x44] sm:$0xf] }
  0x5f   : > { %1139 = vmatpush.bf16.msrb.mxu2 %v1829_v34  ;;  %v2638_v34 = vpack.c.bf16 %v273_v19, %v273_v19  ;;  %v1601_v42 = vor.u32 %v1980_v32, %v1598_v33  ;;  %v1960_v57 = vld [vmem:[%s2478_s6 + $0xc4] sm:$0xf]  ;;  %v1582_v61 = vld [vmem:[%s2478_s6 + $0x148] sm:$0xf0]  ;;  %v1942_v4 = vld [vmem:[%s2478_s6 + $0x34] sm:$0xf] }
  0x60   : > { %1152 = vmatpush.bf16.msrb.mxu3 %v1893_v38  ;;  %v2644_v38 = vpack.c.bf16 %v274_v24, %v274_v24  ;;  %v1992_v62 = vld [vmem:[%s2478_s6 + $0x1c4] sm:$0xf]  ;;  %v1646_v0 = vld [vmem:[%s2478_s6 + $0x1c8] sm:$0xf0]  ;;  %v1446_v5 = vld [vmem:[%s2478_s6 + $0x38] sm:$0xf0] }
  0x61   : > { %1114 = vmatpush.bf16.msrb.mxu0 %v1693_v44  ;;  %v1462_v44 = vld [vmem:[%s2478_s6 + $0x58] sm:$0xf0]  ;;  %v1958_v6 = vld [vmem:[%s2478_s6 + $0xb4] sm:$0xf]  ;;  %v1649_v7 = vor.u32 %v1992_v62, %v1646_v0  ;;  %v1940_v19 = vld [vmem:[%s2478_s6 + $0x24] sm:$0xf] }
  0x62   : > { %1127 = vmatpush.bf16.msrb.mxu1 %v1757_v45  ;;  %v1962_v45 = vld [vmem:[%s2478_s6 + $0xd4] sm:$0xf]  ;;  %v1465_v52 = vor.u32 %v1946_v43, %v1462_v44  ;;  %v1574_v11 = vld [vmem:[%s2478_s6 + $0x138] sm:$0xf0]  ;;  %v1502_v23 = vld [vmem:[%s2478_s6 + $0xa8] sm:$0xf0] }
  0x63   : > { %1140 = vmatpush.bf16.msrb.mxu2 %v1821_v46  ;;  %v1665_v46 = vor.u32 %v1996_v35, %v1662_v36  ;;  %v1529_v53 = vor.u32 %v1962_v45, %v1526_v47  ;;  %v1974_v10 = vld [vmem:[%s2478_s6 + $0x134] sm:$0xf]  ;;  %v1972_v24 = vld [vmem:[%s2478_s6 + $0x124] sm:$0xf]  ;;  %v1630_v27 = vld [vmem:[%s2478_s6 + $0x1a8] sm:$0xf0] }
  0x64   : > { %1153 = vmatpush.bf16.msrb.mxu3 %v1885_v50  ;;  %v1994_v50 = vld [vmem:[%s2478_s6 + $0x1d4] sm:$0xf]  ;;  %v1577_v18 = vor.u32 %v1974_v10, %v1574_v11  ;;  %v1430_v32 = vld [vmem:[%s2478_s6 + $0x18] sm:$0xf0]  ;;  %v1936_v45 = vld [vmem:[%s2478_s6 + $0x4] sm:$0xf] }
  0x65   : > { %1115 = vmatpush.bf16.msrb.mxu0 %v1685_v56  ;;  %v1454_v56 = vld [vmem:[%s2478_s6 + $0x48] sm:$0xf0]  ;;  %v1657_v58 = vor.u32 %v1994_v50, %v1654_v51  ;;  %v1990_v12 = vld [vmem:[%s2478_s6 + $0x1b4] sm:$0xf]  ;;  %v1494_v36 = vld [vmem:[%s2478_s6 + $0x98] sm:$0xf0] }
  0x66   : > { %1128 = vmatpush.bf16.msrb.mxu1 %v1749_v59  ;;  %v1518_v59 = vld [vmem:[%s2478_s6 + $0xc8] sm:$0xf0]  ;;  %v1938_v31 = vld [vmem:[%s2478_s6 + $0x14] sm:$0xf]  ;;  %v1622_v43 = vld [vmem:[%s2478_s6 + $0x198] sm:$0xf0] }
  0x67   : > { %1141 = vmatpush.bf16.msrb.mxu2 %v1813_v60  ;;  %v1976_v60 = vld [vmem:[%s2478_s6 + $0x144] sm:$0xf]  ;;  %v1521_v2 = vor.u32 %v1960_v57, %v1518_v59  ;;  %v1954_v33 = vld [vmem:[%s2478_s6 + $0x94] sm:$0xf]  ;;  %v1433_v44 = vor.u32 %v1938_v31, %v1430_v32  ;;  %v1486_v50 = vld [vmem:[%s2478_s6 + $0x88] sm:$0xf0] }
  0x68   : > { %1154 = vmatpush.bf16.msrb.mxu3 %v1877_v1  ;;  %v1457_v1 = vor.u32 %v1944_v55, %v1454_v56  ;;  %v1585_v3 = vor.u32 %v1976_v60, %v1582_v61  ;;  %v1497_v47 = vor.u32 %v1954_v33, %v1494_v36  ;;  %v1952_v49 = vld [vmem:[%s2478_s6 + $0x84] sm:$0xf]  ;;  %v1614_v55 = vld [vmem:[%s2478_s6 + $0x188] sm:$0xf0]  ;;  %v2014_v56 = vld [vmem:[%s2478_s6 + $0x274] sm:$0xf] }
  0x69   : > { %1116 = vmatpush.bf16.msrb.mxu0 %v1677_v8  ;;  %v1510_v8 = vld [vmem:[%s2478_s6 + $0xb8] sm:$0xf0]  ;;  %v1968_v51 = vld [vmem:[%s2478_s6 + $0x104] sm:$0xf]  ;;  %v2046_v61 = vld [vmem:[%s2478_s6 + $0x374] sm:$0xf]  ;;  %v1489_v0 = vor.u32 %v1952_v49, %v1486_v50 }
  0x6a   : > { %1129 = vmatpush.bf16.msrb.mxu1 %v1741_v13  ;;  %v1638_v13 = vld [vmem:[%s2478_s6 + $0x1b8] sm:$0xf0]  ;;  %v1513_v15 = vor.u32 %v1958_v6, %v1510_v8  ;;  %v2012_v8 = vld [vmem:[%s2478_s6 + $0x264] sm:$0xf]  ;;  %v1726_v10 = vld [vmem:[%s2478_s6 + $0x268] sm:$0xf0] }
  0x6b   : > { %1142 = vmatpush.bf16.msrb.mxu2 %v1805_v14  ;;  %v1449_v14 = vor.u32 %v1942_v4, %v1446_v5  ;;  %v1641_v22 = vor.u32 %v1990_v12, %v1638_v13  ;;  %v1734_v57 = vld [vmem:[%s2478_s6 + $0x278] sm:$0xf0]  ;;  %v2028_v11 = vld [vmem:[%s2478_s6 + $0x2e4] sm:$0xf]  ;;  %v1790_v13 = vld [vmem:[%s2478_s6 + $0x2e8] sm:$0xf0] }
  0x6c   : > { %1155 = vmatpush.bf16.msrb.mxu3 %v1869_v20  ;;  %1117 = vmatmul.bf16.vlgmr.msrb.gmra.mxu0 %v2642_v37  ;;  %v1438_v20 = vld [vmem:[%s2478_s6 + $0x28] sm:$0xf0]  ;;  %v1798_v60 = vld [vmem:[%s2478_s6 + $0x2f8] sm:$0xf0]  ;;  %v1737_v5 = vor.u32 %v2014_v56, %v1734_v57  ;;  %v2024_v36 = vld [vmem:[%s2478_s6 + $0x2c4] sm:$0xf] }
  0x6d   : > { %1161 = vmatpush.bf16.msra.mxu0 %v1481_v21  ;;  %1130 = vmatmul.bf16.vlgmr.msrb.gmra.mxu1 %v2646_v40  ;;  %v1956_v21 = vld [vmem:[%s2478_s6 + $0xa4] sm:$0xf]  ;;  %v1441_v28 = vor.u32 %v1940_v19, %v1438_v20  ;;  %v1862_v62 = vld [vmem:[%s2478_s6 + $0x378] sm:$0xf0]  ;;  %v1918_v19 = vld [vmem:[%s2478_s6 + $0x3e8] sm:$0xf0]  ;;  %v1729_v20 = vor.u32 %v2012_v8, %v1726_v10 }
  0x6e   : > { %1174 = vmatpush.bf16.msra.mxu1 %v1545_v25  ;;  %1143 = vmatmul.bf16.vlgmr.msrb.gmra.mxu2 %v2638_v34  ;;  %v1566_v25 = vld [vmem:[%s2478_s6 + $0x128] sm:$0xf0]  ;;  %v1505_v29 = vor.u32 %v1956_v21, %v1502_v23  ;;  %v1793_v21 = vor.u32 %v2028_v11, %v1790_v13  ;;  %v2010_v23 = vld [vmem:[%s2478_s6 + $0x254] sm:$0xf]  ;;  %v1910_v31 = vld [vmem:[%s2478_s6 + $0x3d8] sm:$0xf0] }
  0x6f   : > { %1187 = vmatpush.bf16.msra.mxu2 %v1609_v26  ;;  %1156 = vmatmul.bf16.vlgmr.msrb.gmra.mxu3 %v2644_v38  ;;  %v1988_v26 = vld [vmem:[%s2478_s6 + $0x1a4] sm:$0xf]  ;;  %v2022_v49 = vld [vmem:[%s2478_s6 + $0x2b4] sm:$0xf]  ;;  %v1686_v10 = vld [vmem:[%s2478_s6 + $0x218] sm:$0xf0] }
  0x70   : > { %1200 = vmatpush.bf16.msra.mxu3 %v1673_v30  ;;  %v1569_v30 = vor.u32 %v1972_v24, %v1566_v25  ;;  %v1633_v35 = vor.u32 %v1988_v26, %v1630_v27  ;;  %v1718_v24 = vld [vmem:[%s2478_s6 + $0x258] sm:$0xf0]  ;;  %v2026_v25 = vld [vmem:[%s2478_s6 + $0x2d4] sm:$0xf]  ;;  %s2250_s24 = sshra.s32 %s1288_s19, 4  ;;  %s2256_s30 = scalar_lea.hbm %s2820_s3, 32  ;;  %s2251_s24 = int_to_ptr.hbm [resolvable:$true] %s2250_s24 }
  0x71   : > { %1162 = vmatpush.bf16.msra.mxu0 %v1473_v39  ;;  %v1970_v39 = vld [vmem:[%s2478_s6 + $0x114] sm:$0xf]  ;;  %v1782_v27 = vld [vmem:[%s2478_s6 + $0x2d8] sm:$0xf0]  ;;  %v1721_v32 = vor.u32 %v2010_v23, %v1718_v24  ;;  %v2000_v23 = vld [vmem:[%s2478_s6 + $0x204] sm:$0xf]  ;;  %p2257_p10 = scmp.lt.s32.totalorder %s2251_s24, %s2820_s3 }
  0x72   : > { %1175 = vmatpush.bf16.msra.mxu1 %v1537_v41  ;;  %v1558_v41 = vld [vmem:[%s2478_s6 + $0x118] sm:$0xf0]  ;;  %v2002_v8 = vld [vmem:[%s2478_s6 + $0x214] sm:$0xf]  ;;  %v1678_v24 = vld [vmem:[%s2478_s6 + $0x208] sm:$0xf0] }
  0x73   : > { %1188 = vmatpush.bf16.msra.mxu2 %v1601_v42  ;;  %v1986_v42 = vld [vmem:[%s2478_s6 + $0x194] sm:$0xf]  ;;  %v1561_v48 = vor.u32 %v1970_v39, %v1558_v41  ;;  %v1774_v41 = vld [vmem:[%s2478_s6 + $0x2c8] sm:$0xf0]  ;;  %v1750_v13 = vld [vmem:[%s2478_s6 + $0x298] sm:$0xf0] }
  0x74   : > { %1201 = vmatpush.bf16.msra.mxu3 %v1665_v46  ;;  %v1422_v46 = vld [vmem:[%s2478_s6 + $0x8] sm:$0xf0]  ;;  %v2018_v11 = vld [vmem:[%s2478_s6 + $0x294] sm:$0xf]  ;;  %s2252_s26 = scalar_lea.hbm %s2251_s24, 16 }
  0x75   : > { %1163 = vmatpush.bf16.msra.mxu0 %v1465_v52  ;;  %v1625_v52 = vor.u32 %v1986_v42, %v1622_v43  ;;  %v1425_v59 = vor.u32 %v1936_v45, %v1422_v46  ;;  %v1838_v42 = vld [vmem:[%s2478_s6 + $0x348] sm:$0xf0]  ;;  %v2056_v43 = vld [vmem:[%s2478_s6 + $0x3c4] sm:$0xf]  ;;  %v1777_v45 = vor.u32 %v2024_v36, %v1774_v41  ;;  %v411_v41 = vld [vmem:[%s235_s11] sm:$0x3]  ;;  %p2253_p7 = scmp.ne.s32.totalorder %s2251_s24, %s2252_s26  ;;  %p2258_p11 = scmp.lt.s32.totalorder %s2256_s30, %s2252_s26 }
  0x76   : > { %1176 = vmatpush.bf16.msra.mxu1 %v1529_v53  ;;  %v1550_v53 = vld [vmem:[%s2478_s6 + $0x108] sm:$0xf0] }
  0x77   : > { %1189 = vmatpush.bf16.msra.mxu2 %v1593_v54  ;;  %v1984_v54 = vld [vmem:[%s2478_s6 + $0x184] sm:$0xf]  ;;  %p2254_p8 = pnand %p2253_p7, %p2438_p0  ;;  %p2259_p12 = por %p2258_p11, %p2257_p10 }
  0x78   : > { %1202 = vmatpush.bf16.msra.mxu3 %v1657_v58  ;;  %v2030_v58 = vld [vmem:[%s2478_s6 + $0x2f4] sm:$0xf]  ;;  %v1617_v4 = vor.u32 %v1984_v54, %v1614_v55  ;;  %v1894_v55 = vld [vmem:[%s2478_s6 + $0x3b8] sm:$0xf0] }
  0x79   : > { %1164 = vmatpush.bf16.msra.mxu0 %v1457_v1  ;;  %v1553_v1 = vor.u32 %v1968_v51, %v1550_v53  ;;  %v1801_v6 = vor.u32 %v2030_v58, %v1798_v60  ;;  %v1766_v51 = vld [vmem:[%s2478_s6 + $0x2b8] sm:$0xf0]  ;;  %v2054_v54 = vld [vmem:[%s2478_s6 + $0x3b4] sm:$0xf]  ;;  %v1694_v60 = vld [vmem:[%s2478_s6 + $0x228] sm:$0xf0]  ;;  %p2255_p9 = pneg %p2254_p8 }
  0x7a   : > { %1177 = vmatpush.bf16.msra.mxu1 %v1521_v2  ;;  %v2062_v2 = vld [vmem:[%s2478_s6 + $0x3f4] sm:$0xf]  ;;  %v1830_v53 = vld [vmem:[%s2478_s6 + $0x338] sm:$0xf0]  ;;  %v1769_v57 = vor.u32 %v2022_v49, %v1766_v51 }
  0x7b   : > { %1190 = vmatpush.bf16.msra.mxu2 %v1585_v3  ;;  %v1926_v3 = vld [vmem:[%s2478_s6 + $0x3f8] sm:$0xf0]  ;;  %p2260_p13 = pnand %p2259_p12, %p2255_p9 }
  0x7c   : > { %1203 = vmatpush.bf16.msra.mxu3 %v1649_v7  ;;  %v1865_v7 = vor.u32 %v2046_v61, %v1862_v62  ;;  %v1929_v12 = vor.u32 %v2062_v2, %v1926_v3  ;;  %v2020_v61 = vld [vmem:[%s2478_s6 + $0x2a4] sm:$0xf]  ;;  %v1897_v62 = vor.u32 %v2054_v54, %v1894_v55  ;;  %v1822_v2 = vld [vmem:[%s2478_s6 + $0x328] sm:$0xf0] }
  0x7d   : > { %1165 = vmatpush.bf16.msra.mxu0 %v1449_v14  ;;  %v2044_v14 = vld [vmem:[%s2478_s6 + $0x364] sm:$0xf] }
  0x7e   : > { %1178 = vmatpush.bf16.msra.mxu1 %v1513_v15  ;;  %v1854_v15 = vld [vmem:[%s2478_s6 + $0x368] sm:$0xf0]  ;;  %v2052_v3 = vld [vmem:[%s2478_s6 + $0x3a4] sm:$0xf] }
  0x7f   : > { %1191 = vmatpush.bf16.msra.mxu2 %v1577_v18  ;;  %v2060_v18 = vld [vmem:[%s2478_s6 + $0x3e4] sm:$0xf] }
  0x80   : > { %1204 = vmatpush.bf16.msra.mxu3 %v1641_v22  ;;  %v1857_v22 = vor.u32 %v2044_v14, %v1854_v15  ;;  %v1921_v26 = vor.u32 %v2060_v18, %v1918_v19  ;;  %v2034_v14 = vld [vmem:[%s2478_s6 + $0x314] sm:$0xf]  ;;  %v1814_v15 = vld [vmem:[%s2478_s6 + $0x318] sm:$0xf0] }
  0x81   : > { %1166 = vmatpush.bf16.msra.mxu0 %v1441_v28  ;;  %v2042_v28 = vld [vmem:[%s2478_s6 + $0x354] sm:$0xf]  ;;  %v1878_v19 = vld [vmem:[%s2478_s6 + $0x398] sm:$0xf0] }
  0x82   : > { %1179 = vmatpush.bf16.msra.mxu1 %v1505_v29  ;;  %v1846_v29 = vld [vmem:[%s2478_s6 + $0x358] sm:$0xf0]  ;;  %v2050_v18 = vld [vmem:[%s2478_s6 + $0x394] sm:$0xf] }
  0x83   : > { %1192 = vmatpush.bf16.msra.mxu2 %v1569_v30  ;;  %v2058_v30 = vld [vmem:[%s2478_s6 + $0x3d4] sm:$0xf]  ;;  %v1849_v33 = vor.u32 %v2042_v28, %v1846_v29  ;;  %v2032_v28 = vld [vmem:[%s2478_s6 + $0x304] sm:$0xf]  ;;  %v1806_v29 = vld [vmem:[%s2478_s6 + $0x308] sm:$0xf0] }
  0x84   : > { %1205 = vmatpush.bf16.msra.mxu3 %v1633_v35  ;;  %v2008_v35 = vld [vmem:[%s2478_s6 + $0x244] sm:$0xf]  ;;  %v1913_v39 = vor.u32 %v2058_v30, %v1910_v31  ;;  %v1870_v31 = vld [vmem:[%s2478_s6 + $0x388] sm:$0xf0] }
  0x85   : > { %1167 = vmatpush.bf16.msra.mxu0 %v1433_v44  ;;  %v2048_v30 = vld [vmem:[%s2478_s6 + $0x384] sm:$0xf] }
  0x86   : > { %1180 = vmatpush.bf16.msra.mxu1 %v1497_v47  ;;  %v2006_v47 = vld [vmem:[%s2478_s6 + $0x234] sm:$0xf] }
  0x87   : > { %1193 = vmatpush.bf16.msra.mxu2 %v1561_v48  ;;  %v1702_v48 = vld [vmem:[%s2478_s6 + $0x238] sm:$0xf0] }
  0x88   : > { %1206 = vmatpush.bf16.msra.mxu3 %v1625_v52  ;;  %v2038_v52 = vld [vmem:[%s2478_s6 + $0x334] sm:$0xf]  ;;  %v1705_v56 = vor.u32 %v2006_v47, %v1702_v48 }
  0x89   : > { %1168 = vmatpush.bf16.msra.mxu0 %v1425_v59  ;;  %v1833_v58 = vor.u32 %v2038_v52, %v1830_v53  ;;  %v2004_v59 = vld [vmem:[%s2478_s6 + $0x224] sm:$0xf] }
  0x8a   : > { %1181 = vmatpush.bf16.msra.mxu1 %v1489_v0  ;;  %v1758_v0 = vld [vmem:[%s2478_s6 + $0x2a8] sm:$0xf0] }
  0x8b   : > { %1194 = vmatpush.bf16.msra.mxu2 %v1553_v1  ;;  %v2036_v1 = vld [vmem:[%s2478_s6 + $0x324] sm:$0xf] }
  0x8c   : > { %1207 = vmatpush.bf16.msra.mxu3 %v1617_v4  ;;  %1169 = vmatmul.bf16.vlgmr.msra.gmra.mxu0 %v2578_v9  ;;  %v2040_v9 = vld [vmem:[%s2478_s6 + $0x344] sm:$0xf]  ;;  %v1886_v4 = vld [vmem:[%s2478_s6 + $0x3a8] sm:$0xf0] }
  0x8d   : > { %1213 = vmatpush.bf16.msrb.mxu0 %v1737_v5  ;;  %1182 = vmatmul.bf16.vlgmr.msra.gmra.mxu1 %v2585_v17  ;;  %v1902_v17 = vld [vmem:[%s2478_s6 + $0x3c8] sm:$0xf0]  ;;  %v1841_v46 = vor.u32 %v2040_v9, %v1838_v42  ;;  %v1697_v5 = vor.u32 %v2004_v59, %v1694_v60  ;;  %v413_v9 = vperm.slane %v411_v41, 0 }
  0x8e   : > { %1226 = vmatpush.bf16.msrb.mxu1 %v1801_v6  ;;  %1195 = vmatmul.bf16.vlgmr.msra.gmra.mxu2 %v2570_v63  ;;  %v1785_v63 = vor.u32 %v2026_v25, %v1782_v27  ;;  %v1905_v50 = vor.u32 %v2056_v43, %v1902_v17  ;;  %v1761_v6 = vor.u32 %v2020_v61, %v1758_v0  ;;  %v2016_v25 = vld [vmem:[%s2478_s6 + $0x284] sm:$0xf]  ;;  %v1742_v27 = vld [vmem:[%s2478_s6 + $0x288] sm:$0xf0] }
  0x8f   : > { %1239 = vmatpush.bf16.msrb.mxu2 %v1865_v7  ;;  %1208 = vmatmul.bf16.vlgmr.msra.gmra.mxu3 %v2583_v16  ;;  %v1710_v16 = vld [vmem:[%s2478_s6 + $0x248] sm:$0xf0]  ;;  %v1825_v7 = vor.u32 %v2036_v1, %v1822_v2  ;;  %v414_v2 = vperm.slane %v411_v41, 1 }
  0x90   : > { %1252 = vmatpush.bf16.msrb.mxu3 %v1929_v12  ;;  %v1713_v44 = vor.u32 %v2008_v35, %v1710_v16  ;;  %v1889_v12 = vor.u32 %v2052_v3, %v1886_v4  ;;  %v1873_v35 = vor.u32 %v2048_v30, %v1870_v31 }
  0x91   : > { %1214 = vmatpush.bf16.msrb.mxu0 %v1729_v20  ;;  %v1689_v20 = vor.u32 %v2002_v8, %v1686_v10 }
  0x92   : > { %1227 = vmatpush.bf16.msrb.mxu1 %v1793_v21  ;;  %v1753_v21 = vor.u32 %v2018_v11, %v1750_v13 }
  0x93   : > { %1240 = vmatpush.bf16.msrb.mxu2 %v1857_v22  ;;  %v1817_v22 = vor.u32 %v2034_v14, %v1814_v15 }
  0x94   : > { %1253 = vmatpush.bf16.msrb.mxu3 %v1921_v26  ;;  %v1881_v26 = vor.u32 %v2050_v18, %v1878_v19 }
  0x95   : > { %1215 = vmatpush.bf16.msrb.mxu0 %v1721_v32  ;;  %v1681_v32 = vor.u32 %v2000_v23, %v1678_v24 }
  0x96   : > { %1228 = vmatpush.bf16.msrb.mxu1 %v1785_v63  ;;  %v1745_v63 = vor.u32 %v2016_v25, %v1742_v27 }
  0x97   : > { %1241 = vmatpush.bf16.msrb.mxu2 %v1849_v33  ;;  %v1809_v33 = vor.u32 %v2032_v28, %v1806_v29 }
  0x98   : > { %1254 = vmatpush.bf16.msrb.mxu3 %v1913_v39 }
  0x99   : > { %1216 = vmatpush.bf16.msrb.mxu0 %v1713_v44 }
  0x9a   : > { %1229 = vmatpush.bf16.msrb.mxu1 %v1777_v45 }
  0x9b   : > { %1242 = vmatpush.bf16.msrb.mxu2 %v1841_v46 }
  0x9c   : > { %1255 = vmatpush.bf16.msrb.mxu3 %v1905_v50 }
  0x9d   : > { %1217 = vmatpush.bf16.msrb.mxu0 %v1705_v56 }
  0x9e   : > { %1230 = vmatpush.bf16.msrb.mxu1 %v1769_v57 }
  0x9f   : > { %1243 = vmatpush.bf16.msrb.mxu2 %v1833_v58 }
  0xa0   : > { %1256 = vmatpush.bf16.msrb.mxu3 %v1897_v62 }
  0xa1   : > { %1218 = vmatpush.bf16.msrb.mxu0 %v1697_v5 }
  0xa2   : > { %1231 = vmatpush.bf16.msrb.mxu1 %v1761_v6 }
  0xa3   : > { %1244 = vmatpush.bf16.msrb.mxu2 %v1825_v7 }
  0xa4   : > { %1257 = vmatpush.bf16.msrb.mxu3 %v1889_v12 }
  0xa5   : > { %1219 = vmatpush.bf16.msrb.mxu0 %v1689_v20 }
  0xa6   : > { %1232 = vmatpush.bf16.msrb.mxu1 %v1753_v21 }
  0xa7   : > { %1245 = vmatpush.bf16.msrb.mxu2 %v1817_v22 }
  0xa8   : > { %1258 = vmatpush.bf16.msrb.mxu3 %v1881_v26 }
  0xa9   : > { %1220 = vmatpush.bf16.msrb.mxu0 %v1681_v32 }
  0xaa   : > { %1233 = vmatpush.bf16.msrb.mxu1 %v1745_v63 }
  0xab   : > { %1246 = vmatpush.bf16.msrb.mxu2 %v1809_v33 }
  0xac   : > { %1259 = vmatpush.bf16.msrb.mxu3 %v1873_v35  ;;  %1221 = vmatmul.bf16.vlgmr.msrb.gmra.mxu0 %v2642_v37 }
  0xad   : > { %1234 = vmatmul.bf16.vlgmr.msrb.gmra.mxu1 %v2646_v40 }
  0xae   : > { %1247 = vmatmul.bf16.vlgmr.msrb.gmra.mxu2 %v2638_v34 }
  0xaf   : > { %1260 = vmatmul.bf16.vlgmr.msrb.gmra.mxu3 %v2644_v38 }
  0xc9   : > { %v1066_v16 = vpop.f32.mrf.mxu0 }
  0xca   : > { %v1079_v36 = vpop.f32.mrf.mxu1  ;;  %v1067_v17 = vadd.f32 %v1066_v16, %v413_v9 }
  0xcc   : > { %v1080_v37 = vadd.f32 %v1079_v36, %v1067_v17 }
  0xd1   : > { %v1092_v39 = vpop.f32.mrf.mxu2  ;;  %v1068_v43 = vpop.f32.mrf.mxu0 }
  0xd2   : > { %v1105_v42 = vpop.f32.mrf.mxu3  ;;  %v1081_v44 = vpop.f32.mrf.mxu1  ;;  %v1093_v40 = vadd.f32 %v1092_v39, %v1080_v37 }
  0xd4   : > { %v1106_v47 = vadd.f32 %v1105_v42, %v1093_v40 }
  0xd9   : > { %v1094_v45 = vpop.f32.mrf.mxu2 }
  0xda   : > { %v1107_v46 = vpop.f32.mrf.mxu3 }
  0xe9   : > { %v1118_v34 = vpop.f32.mrf.mxu0 }
  0xea   : > { %v1119_v48 = vadd.f32 %v1118_v34, %v1106_v47  ;;  %v1131_v38 = vpop.f32.mrf.mxu1 }
  0xec   : > { %v1132_v49 = vadd.f32 %v1131_v38, %v1119_v48 }
  0xf1   : > { %v1144_v50 = vpop.f32.mrf.mxu2  ;;  %v1120_v54 = vpop.f32.mrf.mxu0 }
  0xf2   : > { %v1145_v51 = vadd.f32 %v1144_v50, %v1132_v49  ;;  %v1157_v52 = vpop.f32.mrf.mxu3  ;;  %v1133_v55 = vpop.f32.mrf.mxu1 }
  0xf4   : > { %v1158_v53 = vadd.f32 %v1157_v52, %v1145_v51 }
  0xf6   : > { %v1265_v56 = vmax.f32 %v1158_v53, 0.0 }
  0xf8   : > { %1267 = vst [vmem:[%s2774_s28] sm:$0xff] %v1265_v56 }
  0xf9   : > { %v1146_v57 = vpop.f32.mrf.mxu2 }
  0xfa   : > { %v1159_v58 = vpop.f32.mrf.mxu3 }
 0x109   : > { %v1170_v59 = vpop.f32.mrf.mxu0 }
 0x10a   : > { %v1183_v60 = vpop.f32.mrf.mxu1  ;;  %v1171_v5 = vadd.f32 %v1170_v59, %v414_v2 }
 0x10c   : > { %v1184_v6 = vadd.f32 %v1183_v60, %v1171_v5 }
 0x111   : > { %v1196_v61 = vpop.f32.mrf.mxu2  ;;  %v1172_v0 = vpop.f32.mrf.mxu0 }
 0x112   : > { %v1209_v62 = vpop.f32.mrf.mxu3  ;;  %v1185_v1 = vpop.f32.mrf.mxu1  ;;  %v1197_v7 = vadd.f32 %v1196_v61, %v1184_v6 }
 0x114   : > { %v1210_v8 = vadd.f32 %v1209_v62, %v1197_v7 }
 0x119   : > { %v1198_v3 = vpop.f32.mrf.mxu2 }
 0x11a   : > { %v1211_v4 = vpop.f32.mrf.mxu3 }
 0x129   : > { %v1222_v10 = vpop.f32.mrf.mxu0 }
 0x12a   : > { %v1235_v11 = vpop.f32.mrf.mxu1  ;;  %v1223_v12 = vadd.f32 %v1222_v10, %v1210_v8 }
 0x12c   : > { %v1236_v13 = vadd.f32 %v1235_v11, %v1223_v12 }
 0x131   : > { %v1248_v14 = vpop.f32.mrf.mxu2  ;;  %v1224_v19 = vpop.f32.mrf.mxu0 }
 0x132   : > { %v1249_v15 = vadd.f32 %v1248_v14, %v1236_v13  ;;  %v1261_v18 = vpop.f32.mrf.mxu3  ;;  %v1237_v20 = vpop.f32.mrf.mxu1 }
 0x134   : > { %v1262_v21 = vadd.f32 %v1261_v18, %v1249_v15 }
 0x136   : > { %v1266_v22 = vmax.f32 %v1262_v21, 0.0 }
 0x138   : > { %1268 = vst [vmem:[%s2774_s28 + $0x8] sm:$0xff] %v1266_v22 }
 0x139   : > { %v1250_v23 = vpop.f32.mrf.mxu2 }
 0x13a   : > { %2263 = shalt.err (!%p2260_p13)
}
 0x13b   : > { %2073 = dma.vmem_to_hbm [thread:$0]  (%p2438_p0), %s1286_s10, 256, %s1288_s19, %s1270_s15   ;;  %v1263_v24 = vpop.f32.mrf.mxu3 }
 0x13c PF: > { %s1299_s29 = sand.u32 1, %s2302_s12   ;;  %p2087_p4 = pnand %p1407_p3, %p2442_p2 }
 0x13d   : > { %s1300_s11 = scalar_lea.sflag [#allocation4], %s1299_s29 }
 0x13e   : > { %p2088_p5 = pneg %p2087_p4 }
 0x140   : > { %2297 = dma.done.wait (%p2088_p5), %s1300_s11, 256  }
 0x141   : > { %2299 = vsyncadd (%p2088_p5), %s1300_s11, 4294967040  ;;  %s20_s17 = sadd.s32 1, %s2322_s17   ;;  %s2827_s12 = smov %s2306_s13 }
 0x142   : > { %p17_p1 = scmp.ge.s32.totalorder %s20_s17, 4   ;;  %s2828_s13 = smov %s2310_s14 }
 0x143   : > { %s2829_s14 = smov %s2400_s25  ;;  %s2830_s15 = smov %s2318_s16 }
 0x144   : > { %s2831_s16 = smov %s2833_s18  ;;  %19 = sbr.rel (!%p17_p1) target bundleno = 7 (0x7), region = 94 }
 0x149   :  { %1306 = vsyncpa [#allocation3], 1 }
 0x14a   :  { %1308 = vsyncpa [#allocation3 + $0x1], 1 }
 0x14b   :  { %1309 = vsyncpa [#allocation6], 1 }
 0x14c   :  { %1311 = vsyncpa [#allocation6 + $0x1], 1 }
 0x14d   :  { %1312 = vsyncpa [#allocation4], 1 }
 0x14e   :  { %1314 = vsyncpa [#allocation4 + $0x1], 1 }

</bundles_post_ra>
